<compile_context>
chip_gen: v7x
topology: tpu7x:2x2x1
jax: 0.10.0
libtpu: 0.0.40
codegen_flags: <defaults>
</compile_context>

<pallas_src>
import functools

import jax
import jax.numpy as jnp
from jax.experimental import pallas as pl
from jax.experimental.pallas import tpu as pltpu


def _round_up(v, m):
    return ((v + m - 1) // m) * m


def _pow_static(u, gamma):
    """u ** gamma with gamma a compile-time Python float.

    Half-integer gammas (0.5, 1, 1.5, 2, ...) lower to multiply/sqrt chains
    (no exp/log); anything else falls back to a guarded exp/log form.
    """
    if gamma == 0.0:
        return jnp.ones_like(u)
    two_g = 2.0 * gamma
    if two_g == int(two_g) and 0.0 < gamma <= 4.0:
        k, h = divmod(int(two_g), 2)
        r = None
        for _ in range(k):
            r = u if r is None else r * u
        if h:
            s = jnp.sqrt(u)
            r = s if r is None else r * s
        return r
    return jnp.where(u > 0.0,
                     jnp.exp(gamma * jnp.log(jnp.maximum(u, 1e-38))),
                     0.0)


def _focal_loss_kernel(pred_ref, label_ref, out_ref, acc_ref, *,
                       gamma, alpha, n_rows, n_cols, tile_n, tiles_per_part,
                       needs_mask):
    t = pl.program_id(1)  # row-tile within this partition ("arbitrary" axis)

    @pl.when(t == 0)
    def _init():
        acc_ref[...] = jnp.zeros_like(acc_ref)

    x = pred_ref[...].astype(jnp.float32)   # logits  [tile_n, C]
    y = label_ref[...].astype(jnp.float32)  # targets [tile_n, C]

    # Shared transcendental: e = exp(-|x|) feeds both the stable BCE log term
    # and the sigmoid (one exp + one log1p + one divide per element).
    e = jnp.exp(-jnp.abs(x))
    # binary_cross_entropy_with_logits, reduction='none' (stable form)
    bce = jnp.maximum(x, 0.0) - x * y + jnp.log1p(e)

    inv = 1.0 / (1.0 + e)                    # sigmoid(|x|)
    p = jnp.where(x >= 0.0, inv, e * inv)    # sigmoid(x)

    p_t = y * p + (1.0 - y) * (1.0 - p)
    u = jnp.maximum(1.0 - p_t, 0.0)
    loss = bce * _pow_static(u, gamma)       # focal modulating factor
    if alpha > 0.0:                          # alpha balancing branch
        loss = loss * (y * alpha + (1.0 - y) * (1.0 - alpha))

    if needs_mask:
        # Zero rows that fall past N (ragged last tile / clamped duplicate
        # tiles introduced by the parallel partition split).
        logical_tile = pl.program_id(0) * tiles_per_part + t
        rows = logical_tile * tile_n + jax.lax.broadcasted_iota(
            jnp.int32, loss.shape, 0)
        loss = jnp.where(rows < n_rows, loss, 0.0)

    # Steady state: pure VPU elementwise accumulate -- no reduce, no store.
    acc_ref[...] += loss

    @pl.when(t == pl.num_programs(1) - 1)
    def _finalize():
        # loss.mean(1).sum() == sum(loss) / C for this partition's rows.
        partial = jnp.sum(acc_ref[...]) * (1.0 / n_cols)
        out_ref[...] = jnp.broadcast_to(partial, out_ref.shape).astype(
            out_ref.dtype)


def _choose_tile_n(n, c, in_itemsize, tile_n,
                   vmem_budget_bytes=20 * 1024 * 1024):
    """Largest row tile <= tile_n whose buffering (2 inputs x 2 pipeline
    buffers + the f32 accumulator) stays inside a conservative VMEM budget
    that is safe on every generation (incl. v7x's 64 MiB physical VMEM)."""
    sub = 16 if in_itemsize < 4 else 8       # bf16 native sublane tiling
    bytes_per_row = c * (4 * in_itemsize + 4)
    max_rows = max(sub, (vmem_budget_bytes // bytes_per_row) // sub * sub)
    tile_n = min(int(tile_n), max_rows, _round_up(n, sub))
    return max(sub, (tile_n // sub) * sub)


def focal_loss(pred, label, gamma=1.5, alpha=0.25, tile_n=512,
               num_partitions=2):
    """Pallas implementation of ultralytics FocalLoss.forward."""
    assert pred.shape == label.shape and pred.ndim == 2
    n, c = pred.shape

    itemsize = max(jnp.dtype(pred.dtype).itemsize,
                   jnp.dtype(label.dtype).itemsize)
    tile_n = _choose_tile_n(n, c, itemsize, tile_n)

    num_blocks = -(-n // tile_n)
    num_parts = max(1, min(int(num_partitions), num_blocks))
    tiles_per_part = -(-num_blocks // num_parts)
    needs_mask = (n % tile_n != 0) or (num_parts * tiles_per_part != num_blocks)

    kernel = functools.partial(
        _focal_loss_kernel,
        gamma=float(gamma), alpha=float(alpha),
        n_rows=n, n_cols=float(c), tile_n=tile_n,
        tiles_per_part=tiles_per_part, needs_mask=needs_mask)

    if num_parts * tiles_per_part == num_blocks:
        def in_map(p_i, t_i):
            return (p_i * tiles_per_part + t_i, 0)
    else:
        last_block = num_blocks - 1

        def in_map(p_i, t_i):
            # Clamp so the padded grid never indexes past the last real block;
            # the row mask zeroes the duplicated contribution.
            return (jnp.minimum(p_i * tiles_per_part + t_i, last_block), 0)

    out = pl.pallas_call(
        kernel,
        out_shape=jax.ShapeDtypeStruct((num_parts, 8, 128), jnp.float32),
        grid_spec=pltpu.PrefetchScalarGridSpec(
            num_scalar_prefetch=0,
            grid=(num_parts, tiles_per_part),
            in_specs=[pl.BlockSpec((tile_n, c), in_map),
                      pl.BlockSpec((tile_n, c), in_map)],
            out_specs=pl.BlockSpec((1, 8, 128), lambda p_i, t_i: (p_i, 0, 0)),
            scratch_shapes=[pltpu.VMEM((tile_n, c), jnp.float32)],
        ),
        compiler_params=pltpu.CompilerParams(
            # Partitions are independent (own accumulator + output row) ->
            # safe to shard across TensorCores; tile axis is a sequential
            # reduction into the VMEM accumulator.
            dimension_semantics=("parallel", "arbitrary"),
        ),
    )(pred, label)
    return jnp.sum(out[:, 0, 0])


def focal_loss_ref(pred, label, gamma=1.5, alpha=0.25):
    """Pure-JAX reference mirroring the PyTorch module."""
    pred = pred.astype(jnp.float32)
    label = label.astype(jnp.float32)
    bce = jnp.maximum(pred, 0.0) - pred * label + jnp.log1p(jnp.exp(-jnp.abs(pred)))
    p = jax.nn.sigmoid(pred)
    p_t = label * p + (1 - label) * (1 - p)
    loss = bce * (1.0 - p_t) ** gamma
    if alpha > 0:
        loss = loss * (label * alpha + (1 - label) * (1 - alpha))
    return loss.mean(1).sum()


if __name__ == "__main__":
    key = jax.random.PRNGKey(0)

    # 1) Ragged rows, non-128 class count, small tile -> exercises the
    #    2-partition parallel split, accumulator pipeline and row mask.
    k1, k2, key = jax.random.split(key, 3)
    pred = jax.random.normal(k1, (200, 80), dtype=jnp.float32) * 2.0
    label = jax.random.bernoulli(k2, 0.3, (200, 80)).astype(jnp.float32)
    out = jax.block_until_ready(focal_loss(pred, label, tile_n=64))
    ref = focal_loss_ref(pred, label)
    assert jnp.allclose(out, ref, rtol=1e-5, atol=1e-5), (out, ref)

    # 2) Exactly-tiled case with default tile size (single partition / tile).
    k1, k2, key = jax.random.split(key, 3)
    pred = jax.random.normal(k1, (256, 128), dtype=jnp.float32) * 3.0
    label = jax.random.bernoulli(k2, 0.5, (256, 128)).astype(jnp.float32)
    out = jax.block_until_ready(focal_loss(pred, label))
    ref = focal_loss_ref(pred, label)
    assert jnp.allclose(out, ref, rtol=1e-5, atol=1e-5), (out, ref)

    # 3) Odd block count (clamp path), integer gamma, alpha disabled branch.
    k1, k2, key = jax.random.split(key, 3)
    pred = jax.random.normal(k1, (72, 40), dtype=jnp.float32)
    label = jax.random.bernoulli(k2, 0.2, (72, 40)).astype(jnp.float32)
    out = jax.block_until_ready(
        focal_loss(pred, label, gamma=2.0, alpha=0.0, tile_n=24))
    ref = focal_loss_ref(pred, label, gamma=2.0, alpha=0.0)
    assert jnp.allclose(out, ref, rtol=1e-5, atol=1e-5), (out, ref)

    print("KERNEL_OK")
</pallas_src>

<mosaic_0001>
module attributes {stable_mosaic.version = 11 : i64} {
  func.func @_focal_loss_kernel(%arg0: i32, %arg1: i32, %arg2: memref<64x80xf32, #tpu.memory_space<vmem>>, %arg3: memref<64x80xf32, #tpu.memory_space<vmem>>, %arg4: memref<1x8x128xf32, #tpu.memory_space<vmem>>, %arg5: memref<64x80xf32, #tpu.memory_space<vmem>>) attributes {dimension_semantics = [#tpu.dimension_semantics<parallel>, #tpu.dimension_semantics<arbitrary>], iteration_bounds = array<i64: 2, 2>, scalar_prefetch = 0 : i64, scratch_operands = 1 : i64, tpu.core_type = #tpu.core_type<tc>, window_params = [{transform_indices = @transform_0, window_bounds = array<i64: 64, 80>}, {transform_indices = @transform_1, window_bounds = array<i64: 64, 80>}, {transform_indices = @transform_2, window_bounds = array<i64: 1, 8, 128>}]} {
    %c0_i32 = arith.constant 0 : i32
    %0 = arith.cmpi eq, %arg1, %c0_i32 : i32
    %1 = arith.extui %0 : i1 to i32
    %c0_i32_0 = arith.constant 0 : i32
    %2 = arith.cmpi ne, %1, %c0_i32_0 : i32
    scf.if %2 {
      %cst_21 = arith.constant 0.000000e+00 : f32
      %61 = vector.broadcast %cst_21 : f32 to vector<64x80xf32>
      %c0_22 = arith.constant 0 : index
      %c0_23 = arith.constant 0 : index
      %62 = vector.load %arg5[%c0_22, %c0_23] : memref<64x80xf32, #tpu.memory_space<vmem>>, vector<64x80xf32>
      tpu.vector_store %arg5[%c0_22, %c0_23], %61 {strides = array<i32>} : memref<64x80xf32, #tpu.memory_space<vmem>>, vector<64x80xf32>,
    } else {
    }
    %c0 = arith.constant 0 : index
    %c0_1 = arith.constant 0 : index
    %3 = vector.load %arg2[%c0, %c0_1] : memref<64x80xf32, #tpu.memory_space<vmem>>, vector<64x80xf32>
    %c0_2 = arith.constant 0 : index
    %c0_3 = arith.constant 0 : index
    %4 = vector.load %arg3[%c0_2, %c0_3] : memref<64x80xf32, #tpu.memory_space<vmem>>, vector<64x80xf32>
    %5 = math.absf %3 : vector<64x80xf32>
    %cst = arith.constant 0.000000e+00 : f32
    %6 = vector.broadcast %cst : f32 to vector<64x80xf32>
    %7 = arith.subf %6, %5 : vector<64x80xf32>
    %8 = math.exp %7 : vector<64x80xf32>
    %cst_4 = arith.constant 0.000000e+00 : f32
    %9 = vector.broadcast %cst_4 : f32 to vector<64x80xf32>
    %10 = arith.maximumf %3, %9 : vector<64x80xf32>
    %11 = arith.mulf %3, %4 : vector<64x80xf32>
    %12 = arith.subf %10, %11 : vector<64x80xf32>
    %13 = math.log1p %8 : vector<64x80xf32>
    %14 = arith.addf %12, %13 : vector<64x80xf32>
    %cst_5 = arith.constant 1.000000e+00 : f32
    %15 = vector.broadcast %cst_5 : f32 to vector<64x80xf32>
    %16 = arith.addf %15, %8 : vector<64x80xf32>
    %cst_6 = arith.constant 1.000000e+00 : f32
    %17 = vector.broadcast %cst_6 : f32 to vector<64x80xf32>
    %18 = arith.divf %17, %16 : vector<64x80xf32>
    %cst_7 = arith.constant 0.000000e+00 : f32
    %19 = vector.broadcast %cst_7 : f32 to vector<64x80xf32>
    %20 = arith.cmpf oge, %3, %19 : vector<64x80xf32>
    %21 = arith.mulf %8, %18 : vector<64x80xf32>
    %22 = arith.select %20, %18, %21 : vector<64x80xi1>, vector<64x80xf32>
    %23 = arith.mulf %4, %22 : vector<64x80xf32>
    %cst_8 = arith.constant 1.000000e+00 : f32
    %24 = vector.broadcast %cst_8 : f32 to vector<64x80xf32>
    %25 = arith.subf %24, %4 : vector<64x80xf32>
    %cst_9 = arith.constant 1.000000e+00 : f32
    %26 = vector.broadcast %cst_9 : f32 to vector<64x80xf32>
    %27 = arith.subf %26, %22 : vector<64x80xf32>
    %28 = arith.mulf %25, %27 : vector<64x80xf32>
    %29 = arith.addf %23, %28 : vector<64x80xf32>
    %cst_10 = arith.constant 1.000000e+00 : f32
    %30 = vector.broadcast %cst_10 : f32 to vector<64x80xf32>
    %31 = arith.subf %30, %29 : vector<64x80xf32>
    %cst_11 = arith.constant 0.000000e+00 : f32
    %32 = vector.broadcast %cst_11 : f32 to vector<64x80xf32>
    %33 = arith.maximumf %31, %32 : vector<64x80xf32>
    %34 = math.sqrt %33 : vector<64x80xf32>
    %35 = arith.mulf %33, %34 : vector<64x80xf32>
    %36 = arith.mulf %14, %35 : vector<64x80xf32>
    %cst_12 = arith.constant 2.500000e-01 : f32
    %37 = vector.broadcast %cst_12 : f32 to vector<64x80xf32>
    %38 = arith.mulf %4, %37 : vector<64x80xf32>
    %cst_13 = arith.constant 1.000000e+00 : f32
    %39 = vector.broadcast %cst_13 : f32 to vector<64x80xf32>
    %40 = arith.subf %39, %4 : vector<64x80xf32>
    %cst_14 = arith.constant 7.500000e-01 : f32
    %41 = vector.broadcast %cst_14 : f32 to vector<64x80xf32>
    %42 = arith.mulf %40, %41 : vector<64x80xf32>
    %43 = arith.addf %38, %42 : vector<64x80xf32>
    %44 = arith.mulf %36, %43 : vector<64x80xf32>
    %c2_i32 = arith.constant 2 : i32
    %45 = arith.muli %arg0, %c2_i32 : i32
    %46 = arith.addi %45, %arg1 : i32
    %c64_i32 = arith.constant 64 : i32
    %47 = arith.muli %46, %c64_i32 : i32
    %48 = tpu.iota {dimensions = array<i32: 0>} : vector<64x80xi32>
    %49 = vector.broadcast %47 : i32 to vector<64x80xi32>
    %50 = arith.addi %49, %48 : vector<64x80xi32>
    %c200_i32 = arith.constant 200 : i32
    %51 = vector.broadcast %c200_i32 : i32 to vector<64x80xi32>
    %52 = arith.cmpi slt, %50, %51 : vector<64x80xi32>
    %cst_15 = arith.constant 0.000000e+00 : f32
    %53 = vector.broadcast %cst_15 : f32 to vector<64x80xf32>
    %54 = arith.select %52, %44, %53 : vector<64x80xi1>, vector<64x80xf32>
    %c0_16 = arith.constant 0 : index
    %c0_17 = arith.constant 0 : index
    %55 = vector.load %arg5[%c0_16, %c0_17] : memref<64x80xf32, #tpu.memory_space<vmem>>, vector<64x80xf32>
    %56 = arith.addf %55, %54 : vector<64x80xf32>
    %c0_18 = arith.constant 0 : index
    %c0_19 = arith.constant 0 : index
    %57 = vector.load %arg5[%c0_18, %c0_19] : memref<64x80xf32, #tpu.memory_space<vmem>>, vector<64x80xf32>
    tpu.vector_store %arg5[%c0_18, %c0_19], %56 {strides = array<i32>} : memref<64x80xf32, #tpu.memory_space<vmem>>, vector<64x80xf32>,
    %c1_i32 = arith.constant 1 : i32
    %58 = arith.cmpi eq, %arg1, %c1_i32 : i32
    %59 = arith.extui %58 : i1 to i32
    %c0_i32_20 = arith.constant 0 : i32
    %60 = arith.cmpi ne, %59, %c0_i32_20 : i32
    scf.if %60 {
      %c0_21 = arith.constant 0 : index
      %c0_22 = arith.constant 0 : index
      %61 = vector.load %arg5[%c0_21, %c0_22] : memref<64x80xf32, #tpu.memory_space<vmem>>, vector<64x80xf32>
      %62 = vector.shape_cast %61 : vector<64x80xf32> to vector<1x64x80xf32>
      %cst_23 = arith.constant dense<0.000000e+00> : vector<1xf32>
      %63 = vector.multi_reduction <add>, %62, %cst_23 [1, 2] : vector<1x64x80xf32> to vector<1xf32>
      %64 = vector.shape_cast %63 : vector<1xf32> to vector<1x1x1xf32>
      %65 = vector.extract %64[0, 0, 0] : f32 from vector<1x1x1xf32>
      %cst_24 = arith.constant 1.250000e-02 : f32
      %66 = arith.mulf %65, %cst_24 : f32
      %67 = vector.broadcast %66 : f32 to vector<1x8x128xf32>
      %c0_25 = arith.constant 0 : index
      %c0_26 = arith.constant 0 : index
      %c0_27 = arith.constant 0 : index
      %68 = vector.load %arg4[%c0_25, %c0_26, %c0_27] : memref<1x8x128xf32, #tpu.memory_space<vmem>>, vector<1x8x128xf32>
      tpu.vector_store %arg4[%c0_25, %c0_26, %c0_27], %67 {strides = array<i32>} : memref<1x8x128xf32, #tpu.memory_space<vmem>>, vector<1x8x128xf32>,
    } else {
    }
    return
  }
  func.func @transform_0(%arg0: i32, %arg1: i32) -> (i32, i32) {
    %c2_i32 = arith.constant 2 : i32
    %0 = arith.muli %arg0, %c2_i32 : i32
    %1 = arith.addi %0, %arg1 : i32
    %c0_i32 = arith.constant 0 : i32
    %c0_i32_0 = arith.constant 0 : i32
    return %1, %c0_i32 : i32, i32
  }
  func.func @transform_1(%arg0: i32, %arg1: i32) -> (i32, i32) {
    %c2_i32 = arith.constant 2 : i32
    %0 = arith.muli %arg0, %c2_i32 : i32
    %1 = arith.addi %0, %arg1 : i32
    %c0_i32 = arith.constant 0 : i32
    %c0_i32_0 = arith.constant 0 : i32
    return %1, %c0_i32 : i32, i32
  }
  func.func @transform_2(%arg0: i32, %arg1: i32) -> (i32, i32, i32) {
    %c0_i32 = arith.constant 0 : i32
    %c0_i32_0 = arith.constant 0 : i32
    %c0_i32_1 = arith.constant 0 : i32
    return %arg0, %c0_i32, %c0_i32_0 : i32, i32, i32
  }
}

</mosaic_0001>

<bundles_post_ra>
// kernel: tpu_custom_call.1
= control target key start
LH: loop header
LB: loop body
LE: loop exit
PB: predicated region body
PF: predicated region fallthrough
CT: control target
= control target key end

     0   :  { %7 = vsyncpa [#allocation4], 0  ;;  %s1688_s0 = inlined_call_operand.vmem [shape: f32[200,80], index: 0, kind: input, shape index: {}]   ;;  %s1689_s1 = inlined_call_operand.vmem [shape: f32[200,80], index: 1, kind: input, shape index: {}]   ;;  %s1690_s2 = inlined_call_operand.hbm [shape: f32[2,8,128], index: 2, kind: output, shape index: {}]  }
   0x1   :  { %9 = vsyncpa [#allocation4 + $0x1], 0  ;;  %s1091_s9 = smov 0   ;;  %s1093_s10 = smov 0  }
   0x2   :  { %s1095_s11 = smov 0   ;;  %s1097_s12 = smov 0  }
   0x3   :  { %s1099_s13 = smov 0   ;;  %s1101_s14 = smov 0  }
   0x4   :  { %s1103_s15 = smov 0   ;;  %s1105_s16 = smov 0  }
   0x5 LB: > { %s816_s17 = sadd.s32 4294967295, %s1072_s16   ;;  %s817_s18 = sadd.s32 4294967294, %s1072_s16   ;;  %s1072_s16 = sphi %s1105_s16, %s15_s16   ;;  %s1068_s15 = sphi %s1103_s15, %s1713_s15   ;;  %s1064_s14 = sphi %s1101_s14, %s1712_s14   ;;  %s1060_s13 = sphi %s1099_s13, %s1711_s13   ;;  %s1056_s12 = sphi %s1097_s12, %s1710_s12   ;;  %s1052_s11 = sphi %s1095_s11, %s1709_s11   ;;  %s1048_s10 = sphi %s1093_s10, %s1708_s10   ;;  %s1044_s9 = sphi %s1091_s9, %s1707_s9  }
   0x6   : > { %s24_s19 = sadd.s32 1, %s1064_s14  ;;  %s27_s20 = sadd.s32 1, %s1068_s15 }
   0x7   : > { %p25_p0 = scmp.ge.s32.totalorder %s24_s19, 2  ;;  %p104_p1 = scmp.ne.s32.totalorder %s1052_s11, %s1048_s10 }
   0x8   : > { %p105_p2 = scmp.eq.s32.totalorder %s816_s17, 3  ;;  %p110_p4 = scmp.ne.s32.totalorder %s1048_s10, %s1044_s9 }
   0x9   : > { %s1715_s19 = smov (%p25_p0, %s24_s19), 0  ;;  %s1717_s20 = smov (!%p25_p0, %s27_s20), %s1068_s15 }
   0xa   : > { %p1140_p3 = por %p105_p2, %p104_p1  ;;  %p29_p5 = scmp.ge.s32.totalorder %s1717_s20, 2 }
   0xb   : > { %p111_p6 = scmp.eq.s32.totalorder %s817_s18, 3  ;;  %p824_p7 = scmp.ge.s32.totalorder %s1072_s16, 1 }
   0xc   : > { %p171_p8 = scmp.lt.s32.totalorder %s1072_s16, 5  ;;  %s1719_s20 = smov (%p29_p5, %s1717_s20), 0 }
   0xd   : > { %p1150_p9 = por %p111_p6, %p110_p4  ;;  %s91_s23 = ssub.s32 %s1068_s15, %s1719_s20 }
   0xe   : > { %p172_p10 = pnand %p824_p7, %p171_p8  ;;  %s94_s24 = sadd.s32 1, %s1052_s11 }
   0xf   : > { %p92_p11 = scmp.eq.s32.totalorder %s91_s23, 0  ;;  %s207_s26 = sand.u32 (!%p172_p10), 1, %s1048_s10  }
  0x10   : > { %175 = sbr.rel (%p172_p10) target bundleno = 399 (0x18f), region = 28  ;;  %s826_s27 = sshll.u32 (!%p172_p10), %s1060_s13, 1 }
  0x11   : > { %s1158_s25 = scalar_select %p92_p11, %s1052_s11, %s94_s24  }
  0x12   : > { %s1164_s28 = sshll.u32 (!%p172_p10), %s207_s26, 3  ;;  %s1167_s29 = sadd.s32 (!%p172_p10), %s1056_s12, %s826_s27 }
  0x13   : > { %s827_s30 = sshll.u32 (!%p172_p10), %s1167_s29, 3  ;;  %s209_s18 = scalar_lea.vmem (!%p172_p10), [#allocation3], %s1164_s28 }
  0x14   : > { %p217_p12 = scmp.lt.s32.totalorder (!%p172_p10), %s827_s30, 24  ;;  %p832_p13 = scmp.ne.s32.totalorder (!%p172_p10), %s1056_s12, 0 }
  0x17   : > { %s1721_s30 = smov (!%p217_p12, %s827_s30), 24  ;;  %249 = sbr.rel (%p832_p13) target bundleno = 30 (0x1e), region = 32 }
  0x18   : > { %s828_s3 = sshll.u32 %s1721_s30, 3  ;;  %vm250_vm0 = vcmask (!%p832_p13), 654336   ;;  %v1074_v0 = vmov (!%p832_p13), 0.0  }
  0x19   : > { %s1173_s6 = scalar_lea.vmem %s1688_s0, %s828_s3  ;;  %s1178_s17 = scalar_lea.vmem %s1689_s1, %s828_s3  ;;  %251 = vst.msk [vmem:[#allocation2] sm:$0xff] (!%p832_p13), %vm250_vm0, %v1074_v0  ;;  %252 = vst.msk [vmem:[#allocation2 + $0x8] sm:$0xff] (!%p832_p13), %vm250_vm0, %v1074_v0 }
  0x1a   : > { %253 = vst.msk [vmem:[#allocation2 + $0x10] sm:$0xff] (!%p832_p13), %vm250_vm0, %v1074_v0  ;;  %254 = vst.msk [vmem:[#allocation2 + $0x18] sm:$0xff] (!%p832_p13), %vm250_vm0, %v1074_v0 }
  0x1b   : > { %255 = vst.msk [vmem:[#allocation2 + $0x20] sm:$0xff] (!%p832_p13), %vm250_vm0, %v1074_v0  ;;  %256 = vst.msk [vmem:[#allocation2 + $0x28] sm:$0xff] (!%p832_p13), %vm250_vm0, %v1074_v0 }
  0x1c   : > { %257 = vst.msk [vmem:[#allocation2 + $0x30] sm:$0xff] (!%p832_p13), %vm250_vm0, %v1074_v0  ;;  %258 = vst.msk [vmem:[#allocation2 + $0x38] sm:$0xff] (!%p832_p13), %vm250_vm0, %v1074_v0 }
  0x1e PF: > { %v1183_v1 = vld [vmem:[%s1173_s6] sm:$0xff]  ;;  %v1187_v3 = vld [vmem:[%s1173_s6 + $0x8] sm:$0xff]  ;;  %v1191_v6 = vld [vmem:[%s1173_s6 + $0x10] sm:$0xff]  ;;  %v622_v17 = vlaneseq  ;;  %s834_s23 = sshll.u32 %s1167_s29, 6  ;;  %vm672_vm15 = vcmask 654336   ;;  %p835_p0 = scmp.ne.s32.totalorder %s1056_s12, 1 }
  0x1f   : > { %v275_v2 = vand.u32 2147483647, %v1183_v1  ;;  %v276_v5 = vand.u32 2147483647, %v1187_v3  ;;  %v277_v10 = vand.u32 2147483647, %v1191_v6  ;;  %v1219_v29 = vstv %s834_s23 }
  0x20   : > { %v1195_v11 = vld [vmem:[%s1173_s6 + $0x18] sm:$0xff]  ;;  %v1199_v15 = vld [vmem:[%s1173_s6 + $0x20] sm:$0xff]  ;;  %v1207_v21 = vld [vmem:[%s1173_s6 + $0x28] sm:$0xff]  ;;  %v307_v23 = vmax.f32 %v1183_v1, 0.0  ;;  %v1217_v28 = vshrl.u32 %v622_v17, 7  ;;  %v308_v37 = vmax.f32 %v1187_v3, 0.0 }
  0x21   : > { %v283_v4 = vsub.f32 0.0, %v275_v2  ;;  %v284_v8 = vsub.f32 0.0, %v276_v5  ;;  %v285_v12 = vsub.f32 0.0, %v277_v10  ;;  %v278_v14 = vand.u32 2147483647, %v1195_v11  ;;  %v1203_v20 = vld [vmem:[%s1178_s17] sm:$0xff] }
  0x22   : > { %v279_v19 = vand.u32 2147483647, %v1199_v15  ;;  %v315_v24 = vmul.f32 %v1203_v20, %v1183_v1  ;;  %v1222_v30 = vld [vmem:[%s1178_s17 + $0x8] sm:$0xff]  ;;  %v280_v31 = vand.u32 2147483647, %v1207_v21  ;;  %v467_v32 = vsub.f32 1.0, %v1203_v20 }
  0x23   : > { %v291_v7 = vmul.f32 1.442695, %v283_v4  ;;  %v293_v9 = vmul.f32 1.442695, %v284_v8  ;;  %v295_v13 = vmul.f32 1.442695, %v285_v12  ;;  %v1238_v40 = vadd.s32 %v1219_v29, %v1217_v28 }
  0x24   : > { %v286_v16 = vsub.f32 0.0, %v278_v14  ;;  %v287_v25 = vsub.f32 0.0, %v279_v19  ;;  %v1227_v35 = vsub.f32 %v307_v23, %v315_v24  ;;  %v587_v36 = vmul.f32 0.25, %v1203_v20  ;;  %v1232_v38 = vld [vmem:[%s1178_s17 + $0x10] sm:$0xff]  ;;  %v1242_v42 = vld [vmem:[%s1178_s17 + $0x18] sm:$0xff]  ;;  %v1281_v5 = vld [vmem:[%s1178_s17 + $0x20] sm:$0xff] }
  0x25   : > { %914 = vpow2.f32 %v291_v7  ;;  %v595_v39 = vmul.f32 0.75, %v467_v32  ;;  %v468_v41 = vsub.f32 1.0, %v1222_v30  ;;  %v288_v43 = vsub.f32 0.0, %v280_v31 }
  0x26   : > { %916 = vpow2.f32 %v293_v9  ;;  %v297_v18 = vmul.f32 1.442695, %v286_v16  ;;  %v299_v34 = vmul.f32 1.442695, %v287_v25  ;;  %vm435_vm1 = vcmp.ge.f32.partialorder %v1183_v1, 0.0  ;;  %v1310_v25 = vld [vmem:[%s1173_s6 + $0x30] sm:$0xff] }
  0x27   : > { %918 = vpow2.f32 %v295_v13  ;;  %v316_v45 = vmul.f32 %v1222_v30, %v1187_v3  ;;  %v588_v46 = vmul.f32 0.25, %v1222_v30  ;;  %v624_v47 = vadd.s32 8, %v1217_v28 }
  0x28   : > { %920 = vpow2.f32 %v297_v18  ;;  %v596_v48 = vmul.f32 0.75, %v468_v41  ;;  %v469_v50 = vsub.f32 1.0, %v1232_v38  ;;  %vm436_vm2 = vcmp.ge.f32.partialorder %v1187_v3, 0.0 }
  0x29   : > { %v309_v51 = vmax.f32 %v1191_v6, 0.0  ;;  %v317_v52 = vmul.f32 %v1232_v38, %v1191_v6  ;;  %v470_v53 = vsub.f32 1.0, %v1242_v42  ;;  %v301_v54 = vmul.f32 1.442695, %v288_v43 }
  0x2a   : > { %v589_v55 = vmul.f32 0.25, %v1232_v38  ;;  %v597_v56 = vmul.f32 0.75, %v469_v50  ;;  %v625_v57 = vadd.s32 16, %v1217_v28  ;;  %v310_v58 = vmax.f32 %v1195_v11, 0.0 }
  0x2b   : > { %v318_v60 = vmul.f32 %v1242_v42, %v1195_v11  ;;  %v590_v61 = vmul.f32 0.25, %v1242_v42  ;;  %v598_v62 = vmul.f32 0.75, %v470_v53  ;;  %v1272_v63 = vadd.f32 %v595_v39, %v587_v36 }
  0x2c   : > { %v1274_v0 = vsub.f32 %v308_v37, %v316_v45  ;;  %v626_v4 = vadd.s32 24, %v1217_v28  ;;  %v1284_v7 = vadd.s32 %v1219_v29, %v624_v47  ;;  %v311_v8 = vmax.f32 %v1199_v15, 0.0 }
  0x2d   : > { %v319_v9 = vmul.f32 %v1281_v5, %v1199_v15  ;;  %v1289_v10 = vadd.f32 %v596_v48, %v588_v46  ;;  %v1291_v12 = vsub.f32 %v309_v51, %v317_v52  ;;  %vm437_vm3 = vcmp.ge.f32.partialorder %v1191_v6, 0.0 }
  0x2e   : > { %v1295_v13 = vadd.s32 %v1219_v29, %v625_v57  ;;  %v1297_v16 = vadd.f32 %v597_v56, %v589_v55  ;;  %v1299_v17 = vsub.f32 %v310_v58, %v318_v60  ;;  %v1302_v18 = vadd.f32 %v598_v62, %v590_v61 }
  0x2f   : > { %v1209_v22 = vpop.eup %914  ;;  %v1307_v24 = vadd.s32 %v1219_v29, %v626_v4  ;;  %vm438_vm4 = vcmp.ge.f32.partialorder %v1195_v11, 0.0  ;;  %v471_v36 = vsub.f32 1.0, %v1281_v5  ;;  %v1317_v37 = vmul.f32 0.25, %v1281_v5 }
  0x30   : > { %v331_v26 = vadd.f32 1.0, %v1209_v22  ;;  %v1215_v27 = vpop.eup %916  ;;  %v334_v19 = vmul.f32 -0.5, %v1209_v22  ;;  %v337_v39 = vand.u32 2147483647, %v1209_v22  ;;  %v281_v48 = vand.u32 2147483647, %v1310_v25 }
  0x31   : > { %v340_v33 = vadd.f32 1.0, %v1215_v27  ;;  %v1244_v44 = vpop.eup %918  ;;  %v343_v52 = vmul.f32 -0.5, %v1215_v27  ;;  %v1335_v1 = vmul.f32 0.75, %v471_v36  ;;  %v346_v56 = vand.u32 2147483647, %v1215_v27 }
  0x32   : > { %922 = vrcp.f32 %v331_v26  ;;  %v349_v49 = vadd.f32 1.0, %v1244_v44  ;;  %v1265_v59 = vpop.eup %920  ;;  %v335_v51 = vadd.f32 1.0, %v334_v19  ;;  %vm1341_vm5 = vcmp.lt.f32.partialorder %v337_v39, 0.0004427343 }
  0x33   : > { %924 = vrcp.f32 %v340_v33  ;;  %v1277_v2 = vadd.f32 1.0, %v1265_v59  ;;  %v352_v3 = vmul.f32 -0.5, %v1244_v44  ;;  %v1348_v62 = vadd.s32 32, %v1217_v28 }
  0x34   : > { %926 = vpow2.f32 %v299_v34  ;;  %v1313_v34 = vsub.f32 %v311_v8, %v319_v9  ;;  %v289_v8 = vsub.f32 0.0, %v281_v48  ;;  %v336_v9 = vmul.f32 %v1209_v22, %v335_v51 }
  0x35   : > { %928 = vrcp.f32 %v349_v49  ;;  %vm1361_vm6 = vcmp.lt.f32.partialorder %v346_v56, 0.0004427343  ;;  %vm439_vm7 = vcmp.ge.f32.partialorder %v1199_v15, 0.0  ;;  %v361_v56 = vmul.f32 -0.5, %v1265_v59 }
  0x36   : > { %930 = vpow2.f32 %v301_v54  ;;  %vm440_vm9 = vcmp.ge.f32.partialorder %v1207_v21, 0.0  ;;  %vm640_vm11 = vcmp.lt.s32.totalorder %v1238_v40, 200 }
  0x37   : > { %932 = vrcp.f32 %v1277_v2 }
  0x38   : > { %934 = vlog2.f32 %v331_v26 }
  0x39   : > { %936 = vlog2.f32 %v340_v33 }
  0x3a   : > { %938 = vlog2.f32 %v349_v49 }
  0x3c   : > { %v923_v14 = vpop.eup %922 }
  0x3d   : > { %v443_v23 = vmul.f32 %v923_v14, %v1209_v22  ;;  %v925_v31 = vpop.eup %924 }
  0x3e   : > { %v1319_v26 = vpop.eup %926  ;;  %v444_v45 = vmul.f32 %v925_v31, %v1215_v27 }
  0x3f   : > { %v451_v43 = vsel %vm435_vm1, %v923_v14, %v443_v23  ;;  %v1327_v47 = vadd.f32 1.0, %v1319_v26  ;;  %v929_v55 = vpop.eup %928  ;;  %v344_v14 = vadd.f32 1.0, %v343_v52  ;;  %vm641_vm1 = vcmp.lt.s32.totalorder %v1284_v7, 200 }
  0x40   : > { %v459_v33 = vmul.f32 %v451_v43, %v1203_v20  ;;  %v475_v46 = vsub.f32 1.0, %v451_v43  ;;  %v452_v54 = vsel %vm436_vm2, %v925_v31, %v444_v45  ;;  %v445_v61 = vmul.f32 %v929_v55, %v1244_v44  ;;  %v1350_v4 = vpop.eup %930 }
  0x41   : > { %v460_v57 = vmul.f32 %v452_v54, %v1222_v30  ;;  %v476_v58 = vsub.f32 1.0, %v452_v54  ;;  %940 = vrcp.f32 %v1327_v47  ;;  %v1359_v23 = vadd.f32 1.0, %v1350_v4  ;;  %v933_v31 = vpop.eup %932 }
  0x42   : > { %v483_v49 = vmul.f32 %v475_v46, %v467_v32  ;;  %v453_v19 = vsel %vm437_vm3, %v929_v55, %v445_v61  ;;  %v935_v45 = vpop.eup %934  ;;  %942 = vlog2.f32 %v1277_v2  ;;  %v446_v6 = vmul.f32 %v933_v31, %v1265_v59 }
  0x43   : > { %v484_v32 = vmul.f32 %v476_v58, %v468_v41  ;;  %v477_v41 = vsub.f32 1.0, %v453_v19  ;;  %v461_v22 = vmul.f32 %v453_v19, %v1232_v38  ;;  %v937_v46 = vpop.eup %936  ;;  %v303_v54 = vmul.f32 1.442695, %v289_v8  ;;  %v1386_v19 = vld [vmem:[%s1178_s17 + $0x28] sm:$0xff] }
  0x44   : > { %v491_v20 = vadd.f32 %v483_v49, %v459_v33  ;;  %v353_v33 = vadd.f32 1.0, %v352_v3  ;;  %v939_v55 = vpop.eup %938  ;;  %v355_v49 = vand.u32 2147483647, %v1244_v44  ;;  %944 = vrcp.f32 %v1359_v23 }
  0x45   : > { %v492_v30 = vadd.f32 %v484_v32, %v460_v57  ;;  %v485_v52 = vmul.f32 %v477_v41, %v469_v50  ;;  %v454_v57 = vsel %vm438_vm4, %v933_v31, %v446_v6  ;;  %v333_v2 = vmul.f32 0.6931472, %v935_v45 }
  0x46   : > { %v499_v39 = vsub.f32 1.0, %v491_v20  ;;  %v345_v58 = vmul.f32 %v1215_v27, %v344_v14  ;;  %v312_v38 = vmax.f32 %v1207_v21, 0.0  ;;  %v342_v50 = vmul.f32 0.6931472, %v937_v46 }
  0x47   : > { %v500_v51 = vsub.f32 1.0, %v492_v30  ;;  %v354_v61 = vmul.f32 %v1244_v44, %v353_v33  ;;  %v493_v20 = vadd.f32 %v485_v52, %v461_v22  ;;  %v351_v32 = vmul.f32 0.6931472, %v939_v55 }
  0x48   : > { %v1369_v48 = vmax.f32 %v499_v39, 0.0  ;;  %v462_v8 = vmul.f32 %v454_v57, %v1242_v42  ;;  %v478_v11 = vsub.f32 1.0, %v454_v57  ;;  %vm1389_vm8 = vcmp.lt.f32.partialorder %v355_v49, 0.0004427343 }
  0x49   : > { %v1381_v3 = vmax.f32 %v500_v51, 0.0  ;;  %v362_v27 = vadd.f32 1.0, %v361_v56  ;;  %v1395_v14 = vmul.f32 %v1386_v19, %v1207_v21  ;;  %v339_v39 = vsel %vm1341_vm5, %v336_v9, %v333_v2 }
  0x4a   : > { %946 = vrsqrt.f32 %v1369_v48  ;;  %v501_v30 = vsub.f32 1.0, %v493_v20  ;;  %v486_v41 = vmul.f32 %v478_v11, %v470_v53  ;;  %v370_v45 = vmul.f32 -0.5, %v1319_v26 }
  0x4b   : > { %948 = vpow2.f32 %v303_v54  ;;  %v941_v44 = vpop.eup %940  ;;  %v348_v33 = vsel %vm1361_vm6, %v345_v58, %v342_v50  ;;  %v472_v6 = vsub.f32 1.0, %v1386_v19  ;;  %v357_v60 = vsel %vm1389_vm8, %v354_v61, %v351_v32  ;;  %v1420_v54 = vld [vmem:[%s1173_s6 + $0x38] sm:$0xff] }
  0x4c   : > { %950 = vrsqrt.f32 %v1381_v3  ;;  %v447_v22 = vmul.f32 %v941_v44, %v1319_v26  ;;  %v1409_v9 = vmax.f32 %v501_v30, 0.0  ;;  %v364_v42 = vand.u32 2147483647, %v1265_v59  ;;  %v943_v53 = vpop.eup %942 }
  0x4d   : > { %v494_v46 = vadd.f32 %v486_v41, %v462_v8  ;;  %v403_v51 = vadd.f32 %v339_v39, %v1227_v35  ;;  %v1414_v43 = vmul.f32 %v1265_v59, %v362_v27  ;;  %952 = vlog2.f32 %v1327_v47 }
  0x4e   : > { %v455_v52 = vsel %vm439_vm7, %v941_v44, %v447_v22  ;;  %v404_v55 = vadd.f32 %v348_v33, %v1274_v0  ;;  %954 = vrsqrt.f32 %v1409_v9  ;;  %v371_v49 = vadd.f32 1.0, %v370_v45  ;;  %v945_v57 = vpop.eup %944 }
  0x4f   : > { %v373_v56 = vand.u32 2147483647, %v1319_v26  ;;  %vm517_vm10 = vcmp.eq.f32.partialorder %v1369_v48, inf  ;;  %v1427_v35 = vadd.f32 %v357_v60, %v1291_v12  ;;  %v502_v59 = vsub.f32 1.0, %v494_v46 }
  0x50   : > { %v479_v47 = vsub.f32 1.0, %v455_v52  ;;  %v520_v15 = vand.u32 2147483648, %v1369_v48  ;;  %vm1431_vm12 = vcmp.lt.f32.partialorder %v364_v42, 0.0004427343  ;;  %v463_v58 = vmul.f32 %v455_v52, %v1281_v5 }
  0x51   : > { %v448_v50 = vmul.f32 %v945_v57, %v1350_v4  ;;  %v282_v61 = vand.u32 2147483647, %v1420_v54  ;;  %vm519_vm13 = vcmp.eq.f32.partialorder %v1369_v48, 0.0  ;;  %v1440_v20 = vmax.f32 %v502_v59, 0.0 }
  0x52   : > { %v487_v32 = vmul.f32 %v479_v47, %v471_v36  ;;  %vm524_vm14 = vcmp.eq.f32.partialorder %v1381_v3, inf  ;;  %v1447_v11 = vmul.f32 0.6931472, %v943_v53  ;;  %v1450_v31 = vmul.f32 %v1319_v26, %v371_v49 }
  0x53   : > { %v456_v27 = vsel %vm440_vm9, %v945_v57, %v448_v50  ;;  %vm526_vm0 = vcmp.eq.f32.partialorder %v1381_v3, 0.0  ;;  %v527_v5 = vand.u32 2147483648, %v1381_v3  ;;  %956 = vrsqrt.f32 %v1440_v20 }
  0x54   : > { %v947_v2 = vpop.eup %946  ;;  %v495_v41 = vadd.f32 %v487_v32, %v463_v58  ;;  %v290_v45 = vsub.f32 0.0, %v282_v61  ;;  %v464_v22 = vmul.f32 %v456_v27, %v1386_v19  ;;  %v480_v60 = vsub.f32 1.0, %v456_v27  ;;  %v656_v58 = vld [vmem:[#allocation2] sm:$0xff] }
  0x55   : > { %v516_v12 = vmul.f32 %v947_v2, %v1369_v48  ;;  %v1444_v8 = vpop.eup %948  ;;  %vm531_vm2 = vcmp.eq.f32.partialorder %v1409_v9, inf  ;;  %958 = vlog2.f32 %v1359_v23  ;;  %vm533_vm3 = vcmp.eq.f32.partialorder %v1409_v9, 0.0 }
  0x56   : > { %v951_v44 = vpop.eup %950  ;;  %v1465_v42 = vadd.f32 1.0, %v1444_v8  ;;  %v503_v53 = vsub.f32 1.0, %v495_v41  ;;  %v488_v57 = vmul.f32 %v480_v60, %v472_v6  ;;  %v534_v2 = vand.u32 2147483648, %v1409_v9 }
  0x57   : > { %v518_v39 = vsel %vm517_vm10, %v1369_v48, %v516_v12  ;;  %v523_v30 = vmul.f32 %v951_v44, %v1381_v3  ;;  %v953_v52 = vpop.eup %952  ;;  %vm642_vm4 = vcmp.lt.s32.totalorder %v1295_v13, 200  ;;  %v305_v23 = vmul.f32 1.442695, %v290_v45 }
  0x58   : > { %v521_v36 = vsel %vm519_vm13, %v520_v15, %v518_v39  ;;  %v955_v59 = vpop.eup %954  ;;  %v1480_v15 = vmax.f32 %v503_v53, 0.0  ;;  %v496_v61 = vadd.f32 %v488_v57, %v464_v22  ;;  %960 = vrcp.f32 %v1465_v42 }
  0x59   : > { %v571_v33 = vmul.f32 %v521_v36, %v1369_v48  ;;  %v525_v46 = vsel %vm524_vm14, %v1381_v3, %v523_v30  ;;  %v530_v50 = vmul.f32 %v955_v59, %v1409_v9  ;;  %v382_v32 = vand.u32 2147483647, %v1350_v4  ;;  %v657_v36 = vld [vmem:[#allocation2 + $0x8] sm:$0xff] }
  0x5a   : > { %v528_v48 = vsel %vm526_vm0, %v527_v5, %v525_v46  ;;  %962 = vrsqrt.f32 %v1480_v15  ;;  %v366_v44 = vsel %vm1431_vm12, %v1414_v43, %v1447_v11  ;;  %v504_v39 = vsub.f32 1.0, %v496_v61 }
  0x5b   : > { %v579_v49 = vmul.f32 %v571_v33, %v403_v51  ;;  %v572_v47 = vmul.f32 %v528_v48, %v1381_v3  ;;  %v379_v3 = vmul.f32 -0.5, %v1350_v4  ;;  %vm538_vm5 = vcmp.eq.f32.partialorder %v1440_v20, inf }
  0x5c   : > { %v541_v45 = vand.u32 2147483648, %v1440_v20  ;;  %vm643_vm6 = vcmp.lt.s32.totalorder %v1307_v24, 200  ;;  %v1504_v33 = vmax.f32 %v504_v39, 0.0  ;;  %964 = vpow2.f32 %v305_v23 }
  0x5d   : > { %v611_v51 = vmul.f32 %v1272_v63, %v579_v49  ;;  %v580_v12 = vmul.f32 %v572_v47, %v404_v55  ;;  %v532_v63 = vsel %vm531_vm2, %v1409_v9, %v530_v50  ;;  %v957_v40 = vpop.eup %956  ;;  %vm540_vm7 = vcmp.eq.f32.partialorder %v1440_v20, 0.0  ;;  %v658_v49 = vld [vmem:[#allocation2 + $0x10] sm:$0xff] }
  0x5e   : > { %v535_v30 = vsel %vm533_vm3, %v534_v2, %v532_v63  ;;  %v537_v43 = vmul.f32 %v957_v40, %v1440_v20  ;;  %v380_v0 = vadd.f32 1.0, %v379_v3  ;;  %v369_v22 = vmul.f32 0.6931472, %v953_v52 }
  0x5f   : > { %v648_v27 = vsel %vm640_vm11, %v611_v51, 0.0  ;;  %v612_v5 = vmul.f32 %v1289_v10, %v580_v12  ;;  %v573_v41 = vmul.f32 %v535_v30, %v1409_v9  ;;  %966 = vrsqrt.f32 %v1504_v33  ;;  %v959_v60 = vpop.eup %958  ;;  %v659_v51 = vld [vmem:[#allocation2 + $0x18] sm:$0xff] }
  0x60   : > { %v664_v55 = vadd.f32 %v656_v58, %v648_v27  ;;  %v406_v46 = vadd.f32 %v366_v44, %v1299_v17  ;;  %v539_v7 = vsel %vm538_vm5, %v1440_v20, %v537_v43  ;;  %vm1519_vm8 = vcmp.lt.f32.partialorder %v373_v56, 0.0004427343 }
  0x61   : > { %v649_v10 = vsel %vm641_vm1, %v612_v5, 0.0  ;;  %v581_v9 = vmul.f32 %v573_v41, %v1427_v35  ;;  %v607_v35 = vadd.f32 %v1335_v1, %v1317_v37  ;;  %v542_v48 = vsel %vm540_vm7, %v541_v45, %v539_v7  ;;  %v1539_v37 = vld [vmem:[%s1178_s17 + $0x30] sm:$0xff] }
  0x62   : > { %673 = vst.msk [vmem:[#allocation2] sm:$0xff] %vm672_vm15, %v664_v55  ;;  %v665_v11 = vadd.f32 %v657_v36, %v649_v10  ;;  %v636_v17 = vadd.s32 %v1219_v29, %v1348_v62  ;;  %v328_v26 = vsub.f32 %v312_v38, %v1395_v14  ;;  %v574_v56 = vmul.f32 %v542_v48, %v1440_v20 }
  0x63   : > { %v613_v52 = vmul.f32 %v1297_v16, %v581_v9  ;;  %v381_v57 = vmul.f32 %v1350_v4, %v380_v0  ;;  %vm1534_vm9 = vcmp.lt.f32.partialorder %v382_v32, 0.0004427343  ;;  %vm441_vm10 = vcmp.ge.f32.partialorder %v1310_v25, 0.0  ;;  %v961_v16 = vpop.eup %960  ;;  %v660_v0 = vld [vmem:[#allocation2 + $0x20] sm:$0xff] }
  0x64   : > { %674 = vst.msk [vmem:[#allocation2 + $0x8] sm:$0xff] %vm672_vm15, %v665_v11  ;;  %v375_v21 = vsel %vm1519_vm8, %v1450_v31, %v369_v22  ;;  %vm545_vm11 = vcmp.eq.f32.partialorder %v1480_v15, inf  ;;  %v378_v62 = vmul.f32 0.6931472, %v959_v60  ;;  %v963_v4 = vpop.eup %962  ;;  %v582_v14 = vmul.f32 %v574_v56, %v406_v46 }
  0x65   : > { %v650_v1 = vsel %vm642_vm4, %v613_v52, 0.0  ;;  %v548_v20 = vand.u32 2147483648, %v1480_v15  ;;  %v449_v47 = vmul.f32 %v961_v16, %v1444_v8  ;;  %v544_v2 = vmul.f32 %v963_v4, %v1480_v15  ;;  %v661_v52 = vld [vmem:[#allocation2 + $0x28] sm:$0xff] }
  0x66   : > { %v666_v38 = vadd.f32 %v658_v49, %v650_v1  ;;  %vm547_vm12 = vcmp.eq.f32.partialorder %v1480_v15, 0.0  ;;  %v592_v13 = vmul.f32 0.25, %v1386_v19  ;;  %v473_v23 = vsub.f32 1.0, %v1539_v37  ;;  %v1560_v12 = vpop.eup %964 }
  0x67   : > { %v614_v31 = vmul.f32 %v1302_v18, %v582_v14  ;;  %v407_v58 = vadd.f32 %v375_v21, %v1313_v34  ;;  %v628_v50 = vadd.s32 40, %v1217_v28  ;;  %v457_v61 = vsel %vm441_vm10, %v961_v16, %v449_v47 }
  0x68   : > { %675 = vst.msk [vmem:[#allocation2 + $0x10] sm:$0xff] %vm672_vm15, %v666_v38  ;;  %v546_v3 = vsel %vm545_vm11, %v1480_v15, %v544_v2  ;;  %v384_v32 = vsel %vm1534_vm9, %v381_v57, %v378_v62  ;;  %v465_v27 = vmul.f32 %v457_v61, %v1539_v37  ;;  %v481_v18 = vsub.f32 1.0, %v457_v61 }
  0x69   : > { %v651_v34 = vsel %vm643_vm6, %v614_v31, 0.0  ;;  %v549_v63 = vsel %vm547_vm12, %v548_v20, %v546_v3  ;;  %vm552_vm13 = vcmp.eq.f32.partialorder %v1504_v33, inf  ;;  %v1572_v44 = vadd.f32 1.0, %v1560_v12  ;;  %v967_v39 = vpop.eup %966 }
  0x6a   : > { %v667_v55 = vadd.f32 %v659_v51, %v651_v34  ;;  %v575_v5 = vmul.f32 %v549_v63, %v1480_v15  ;;  %v555_v36 = vand.u32 2147483648, %v1504_v33  ;;  %v489_v30 = vmul.f32 %v481_v18, %v473_v23 }
  0x6b   : > { %v551_v40 = vmul.f32 %v967_v39, %v1504_v33  ;;  %vm554_vm14 = vcmp.eq.f32.partialorder %v1504_v33, 0.0  ;;  %v600_v24 = vmul.f32 0.75, %v472_v6  ;;  %968 = vlog2.f32 %v1465_v42 }
  0x6c   : > { %676 = vst.msk [vmem:[#allocation2 + $0x18] sm:$0xff] %vm672_vm15, %v667_v55  ;;  %v583_v41 = vmul.f32 %v575_v5, %v407_v58  ;;  %v497_v45 = vadd.f32 %v489_v30, %v465_v27  ;;  %970 = vrcp.f32 %v1572_v44  ;;  %vm644_vm0 = vcmp.lt.s32.totalorder %v636_v17, 200 }
  0x6d   : > { %v408_v15 = vadd.f32 %v384_v32, %v328_v26  ;;  %v553_v10 = vsel %vm552_vm13, %v1504_v33, %v551_v40  ;;  %v637_v19 = vadd.s32 %v1219_v29, %v628_v50  ;;  %v608_v9 = vadd.f32 %v600_v24, %v592_v13 }
  0x6e   : > { %v615_v43 = vmul.f32 %v607_v35, %v583_v41  ;;  %v556_v11 = vsel %vm554_vm14, %v555_v36, %v553_v10  ;;  %v505_v6 = vsub.f32 1.0, %v497_v45  ;;  %v388_v60 = vmul.f32 -0.5, %v1444_v8 }
  0x6f   : > { %v576_v42 = vmul.f32 %v556_v11, %v1504_v33  ;;  %vm645_vm1 = vcmp.lt.s32.totalorder %v637_v19, 200  ;;  %v391_v26 = vand.u32 2147483647, %v1444_v8  ;;  %v274_v33 = vld [vmem:[%s1178_s17 + $0x38] sm:$0xff]  ;;  %vm442_vm2 = vcmp.ge.f32.partialorder %v1420_v54, 0.0 }
  0x70   : > { %v652_v22 = vsel %vm644_vm0, %v615_v43, 0.0  ;;  %v513_v46 = vmax.f32 %v505_v6, 0.0  ;;  %v389_v49 = vadd.f32 1.0, %v388_v60  ;;  %v313_v59 = vmax.f32 %v1310_v25, 0.0 }
  0x71   : > { %v668_v7 = vadd.f32 %v660_v0, %v652_v22  ;;  %v584_v53 = vmul.f32 %v576_v42, %v408_v15  ;;  %v321_v16 = vmul.f32 %v1539_v37, %v1310_v25  ;;  %v474_v4 = vsub.f32 1.0, %v274_v33 }
  0x72   : > { %972 = vrsqrt.f32 %v513_v46  ;;  %v390_v62 = vmul.f32 %v1444_v8, %v389_v49  ;;  %vm1601_vm3 = vcmp.lt.f32.partialorder %v391_v26, 0.0004427343  ;;  %v593_v13 = vmul.f32 0.25, %v1539_v37  ;;  %v662_v37 = vld [vmem:[#allocation2 + $0x30] sm:$0xff] }
  0x73   : > { %677 = vst.msk [vmem:[#allocation2 + $0x20] sm:$0xff] %vm672_vm15, %v668_v7  ;;  %v616_v35 = vmul.f32 %v608_v9, %v584_v53  ;;  %v329_v2 = vsub.f32 %v313_v59, %v321_v16  ;;  %v629_v25 = vadd.s32 48, %v1217_v28  ;;  %vm559_vm4 = vcmp.eq.f32.partialorder %v513_v46, inf  ;;  %v688_v59 = vld [vmem:[#allocation2 + $0x18] sm:$0xff] (!%p835_p0) }
  0x74   : > { %v562_v58 = vand.u32 2147483648, %v513_v46  ;;  %vm561_vm5 = vcmp.eq.f32.partialorder %v513_v46, 0.0  ;;  %v601_v61 = vmul.f32 0.75, %v473_v23  ;;  %974 = vlog2.f32 %v1572_v44 }
  0x75   : > { %v969_v48 = vpop.eup %968  ;;  %v653_v17 = vsel %vm645_vm1, %v616_v35, 0.0  ;;  %v638_v34 = vadd.s32 %v1219_v29, %v629_v25  ;;  %v397_v5 = vmul.f32 -0.5, %v1560_v12  ;;  %v400_v41 = vand.u32 2147483647, %v1560_v12 }
  0x76   : > { %v971_v56 = vpop.eup %970  ;;  %v669_v57 = vadd.f32 %v661_v52, %v653_v17  ;;  %v387_v21 = vmul.f32 0.6931472, %v969_v48  ;;  %v609_v55 = vadd.f32 %v601_v61, %v593_v13  ;;  %v314_v15 = vmax.f32 %v1420_v54, 0.0  ;;  %v663_v17 = vld [vmem:[#allocation2 + $0x38] sm:$0xff] }
  0x77   : > { %v450_v1 = vmul.f32 %v971_v56, %v1560_v12  ;;  %vm646_vm6 = vcmp.lt.s32.totalorder %v638_v34, 200  ;;  %v398_v23 = vadd.f32 1.0, %v397_v5  ;;  %v322_v10 = vmul.f32 %v274_v33, %v1420_v54 }
  0x78   : > { %678 = vst.msk [vmem:[#allocation2 + $0x28] sm:$0xff] %vm672_vm15, %v669_v57  ;;  %v393_v51 = vsel %vm1601_vm3, %v390_v62, %v387_v21  ;;  %vm401_vm7 = vcmp.lt.f32.partialorder %v400_v41, 0.0004427343  ;;  %v630_v9 = vadd.s32 56, %v1217_v28  ;;  %v594_v60 = vmul.f32 0.25, %v274_v33  ;;  %v685_v28 = vld [vmem:[#allocation2] sm:$0xff] (!%p835_p0) }
  0x79   : > { %v458_v14 = vsel %vm442_vm2, %v971_v56, %v450_v1  ;;  %v409_v32 = vadd.f32 %v393_v51, %v329_v2  ;;  %v399_v0 = vmul.f32 %v1560_v12, %v398_v23  ;;  %v330_v11 = vsub.f32 %v314_v15, %v322_v10  ;;  %v687_v57 = vld [vmem:[#allocation2 + $0x10] sm:$0xff] (!%p835_p0) }
  0x7a   : > { %v466_v20 = vmul.f32 %v458_v14, %v274_v33  ;;  %v482_v47 = vsub.f32 1.0, %v458_v14  ;;  %v639_v35 = vadd.s32 %v1219_v29, %v630_v9  ;;  %v686_v33 = vld [vmem:[#allocation2 + $0x8] sm:$0xff] (!%p835_p0)  ;;  %v693_v16 = vsel (!%p835_p0), %vm672_vm15, %v685_v28, 0.0  ;;  %v689_v21 = vld [vmem:[#allocation2 + $0x20] sm:$0xff] (!%p835_p0) }
  0x7b   : > { %v694_v29 = vsel (!%p835_p0), %vm672_vm15, %v686_v33, 0.0  ;;  %v696_v1 = vsel (!%p835_p0), %vm672_vm15, %v687_v57, 0.0 }
  0x7c   : > { %v973_v31 = vpop.eup %972  ;;  %v490_v8 = vmul.f32 %v482_v47, %v474_v4  ;;  %vm647_vm10 = vcmp.lt.s32.totalorder %v639_v35, 200  ;;  %v695_v62 = vadd.f32 (!%p835_p0), %v694_v29, %v693_v16 }
  0x7d   : > { %v558_v50 = vmul.f32 %v973_v31, %v513_v46 }
  0x7e   : > { %v498_v3 = vadd.f32 %v490_v8, %v466_v20  ;;  %v975_v24 = vpop.eup %974  ;;  %v697_v14 = vadd.f32 (!%p835_p0), %v696_v1, %v695_v62  ;;  %v700_v20 = vsel (!%p835_p0), %vm672_vm15, %v689_v21, 0.0 }
  0x7f   : > { %v560_v27 = vsel %vm559_vm4, %v513_v46, %v558_v50  ;;  %v396_v43 = vmul.f32 0.6931472, %v975_v24  ;;  %v690_v38 = vld [vmem:[#allocation2 + $0x28] sm:$0xff] (!%p835_p0) }
  0x80   : > { %v563_v18 = vsel %vm561_vm5, %v562_v58, %v560_v27  ;;  %v506_v63 = vsub.f32 1.0, %v498_v3  ;;  %v702_v13 = vsel (!%p835_p0), %vm672_vm15, %v690_v38, 0.0 }
  0x81   : > { %v577_v39 = vmul.f32 %v563_v18, %v513_v46  ;;  %v402_v6 = vsel %vm401_vm7, %v399_v0, %v396_v43  ;;  %v602_v46 = vmul.f32 0.75, %v474_v4  ;;  %v698_v4 = vsel (!%p835_p0), %vm672_vm15, %v688_v59, 0.0 }
  0x82   : > { %v514_v36 = vmax.f32 %v506_v63, 0.0  ;;  %v410_v7 = vadd.f32 %v402_v6, %v330_v11  ;;  %v699_v2 = vadd.f32 (!%p835_p0), %v698_v4, %v697_v14 }
  0x83   : > { %v585_v30 = vmul.f32 %v577_v39, %v409_v32  ;;  %v610_v49 = vadd.f32 %v602_v46, %v594_v60 }
  0x84   : > { %976 = vrsqrt.f32 %v514_v36  ;;  %vm566_vm8 = vcmp.eq.f32.partialorder %v514_v36, inf  ;;  %v569_v42 = vand.u32 2147483648, %v514_v36  ;;  %vm568_vm9 = vcmp.eq.f32.partialorder %v514_v36, 0.0 }
  0x85   : > { %v617_v40 = vmul.f32 %v609_v55, %v585_v30  ;;  %v701_v31 = vadd.f32 (!%p835_p0), %v700_v20, %v699_v2 }
  0x87   : > { %v654_v44 = vsel %vm646_vm6, %v617_v40, 0.0  ;;  %v703_v58 = vadd.f32 (!%p835_p0), %v702_v13, %v701_v31 }
  0x88   : > { %v670_v45 = vadd.f32 %v662_v37, %v654_v44 }
  0x8a   : > { %679 = vst.msk [vmem:[#allocation2 + $0x30] sm:$0xff] %vm672_vm15, %v670_v45 }
  0x8e   : > { %v977_v19 = vpop.eup %976 }
  0x8f   : > { %v565_v22 = vmul.f32 %v977_v19, %v514_v36 }
  0x91   : > { %v567_v53 = vsel %vm566_vm8, %v514_v36, %v565_v22  ;;  %v691_v47 = vld [vmem:[#allocation2 + $0x30] sm:$0xff] (!%p835_p0) }
  0x92   : > { %v570_v54 = vsel %vm568_vm9, %v569_v42, %v567_v53  ;;  %v704_v51 = vsel (!%p835_p0), %vm672_vm15, %v691_v47, 0.0 }
  0x93   : > { %v578_v52 = vmul.f32 %v570_v54, %v514_v36  ;;  %v705_v50 = vadd.f32 (!%p835_p0), %v704_v51, %v703_v58 }
  0x95   : > { %v586_v12 = vmul.f32 %v578_v52, %v410_v7 }
  0x96   : > { %684 = sbr.rel (%p835_p0) target bundleno = 375 (0x177), region = 36 }
  0x97   : > { %v618_v48 = vmul.f32 %v610_v49, %v586_v12 }
  0x99   : > { %v655_v26 = vsel %vm647_vm10, %v618_v48, 0.0 }
  0x9a   : > { %v671_v56 = vadd.f32 %v663_v17, %v655_v26 }
  0x9c   : > { %680 = vst.msk [vmem:[#allocation2 + $0x38] sm:$0xff] %vm672_vm15, %v671_v56 }
  0xa3   : > { %v692_v25 = vld [vmem:[#allocation2 + $0x38] sm:$0xff] }
  0xa4   : > { %v706_v8 = vsel %vm672_vm15, %v692_v25, 0.0 }
  0xa5   : > { %v707_v61 = vadd.f32 %v706_v8, %v705_v50 }
  0xa7   : > { %708 = vadd.xlane.f32.xlu0 %v707_v61 }
 0x134   : > { %v709_v3 = vpop.xlane.xlu0 %708 }
 0x135   : > { %v710_v32 = vrot.slane %v709_v3, 4 }
 0x137   : > { %v711_v27 = vadd.f32 %v710_v32, %v709_v3 }
 0x139   : > { %v712_v18 = vrot.slane %v711_v27, 2 }
 0x13b   : > { %v713_v34 = vadd.f32 %v712_v18, %v711_v27 }
 0x13d   : > { %v714_v63 = vrot.slane %v713_v34, 1 }
 0x13f   : > { %v715_v39 = vadd.f32 %v714_v63, %v713_v34 }
 0x141   : > { %840 = vpush %v715_v39 }
 0x172   : > { %s841_s12 = spop %840 }
 0x173   : > { %s717_s24 = smul.f32 0.0125, %s841_s12 }
 0x175   : > { %v718_v55 = vstv %s717_s24 }
 0x176   : > { %719 = vst [vmem:[%s209_s18] sm:$0xff] %v718_v55 }
 0x177 PF: > { %s837_s27 = sshll.u32 %s1060_s13, 7  ;;  %s734_s4 = sshll.u32 %s209_s18, 4  ;;  %s735_s4 = int_to_ptr.vmem [resolvable:$true] %s734_s4 }
 0x178   : > { %s1637_s3 = scalar_lea.hbm %s1690_s2, %s837_s27  ;;  %s721_s5 = scalar_lea.sflag [#allocation4], %s207_s26 }
 0x179   : > { %s978_s6 = scalar_lea.vmem %s735_s4, 128  ;;  %s1075_s7 = smov [#allocation3]  }
 0x17a   : > { %p979_p1 = scmp.ne.s32.totalorder %s735_s4, %s978_s6  ;;  %s982_s8 = sshll.u32 %s1075_s7, 4  ;;  %s983_s8 = int_to_ptr.vmem [resolvable:$false] %s982_s8 }
 0x17b   : > { %s984_s17 = scalar_lea.vmem %s983_s8, 256  ;;  %p985_p5 = scmp.lt.s32.totalorder %s735_s4, %s983_s8 }
 0x17c   : > { %p980_p2 = pnand %p979_p1, %p1140_p3  ;;  %p986_p6 = scmp.lt.s32.totalorder %s984_s17, %s978_s6 }
 0x17e   : > { %p981_p4 = pneg %p980_p2  ;;  %p987_p7 = por %p986_p6, %p985_p5 }
 0x180   : > { %p988_p8 = pnand %p987_p7, %p981_p4 }
 0x182   : > { %991 = shalt.err (!%p988_p8)
}
 0x183   : > { %s992_s13 = scalar_lea.hbm %s1637_s3, 128  ;;  %s996_s18 = scalar_lea.hbm %s1690_s2, 256 }
 0x184   : > { %p993_p10 = scmp.ne.s32.totalorder %s1637_s3, %s992_s13  ;;  %p997_p13 = scmp.lt.u32.totalorder %s1637_s3, %s1690_s2 }
 0x185   : > { %p998_p0 = scmp.lt.u32.totalorder %s996_s18, %s992_s13  ;;  %p1000_p2 = scmp.lt.u32.totalorder %s992_s13, %s1637_s3 }
 0x186   : > { %p994_p11 = pnand %p993_p10, %p1140_p3 }
 0x187   : > { %p999_p1 = por %p998_p0, %p997_p13 }
 0x188   : > { %p995_p12 = pneg %p994_p11 }
 0x189   : > { %p1001_p4 = por %p1000_p2, %p999_p1 }
 0x18b   : > { %p1002_p5 = pnand %p1001_p4, %p995_p12 }
 0x18d   : > { %1005 = shalt.err (!%p1002_p5)
}
 0x18e   : > { %842 = dma.vmem_to_hbm [thread:$0]  (%p1140_p3), %s735_s4, 128, %s1637_s3, %s721_s5  }
 0x18f PF: > { %p848_p6 = scmp.ge.s32.totalorder %s1072_s16, 2  ;;  %s746_s24 = sand.u32 1, %s1044_s9  }
 0x190   : > { %s747_s27 = scalar_lea.sflag [#allocation4], %s746_s24 }
 0x191   : > { %p845_p7 = pnand %p848_p6, %p1150_p9 }
 0x193   : > { %1039 = dma.done.wait (!%p845_p7), %s747_s27, 128  }
 0x194   : > { %1041 = vsyncadd (!%p845_p7), %s747_s27, 4294967168  ;;  %s15_s16 = sadd.s32 1, %s1072_s16   ;;  %s1707_s9 = smov %s1048_s10 }
 0x195   : > { %p12_p8 = scmp.ge.s32.totalorder %s15_s16, 6   ;;  %s1708_s10 = smov %s1052_s11 }
 0x196   : > { %s1709_s11 = smov %s1158_s25  ;;  %s1710_s12 = smov %s1064_s14 }
 0x197   : > { %s1711_s13 = smov %s1068_s15  ;;  %s1712_s14 = smov %s1715_s19 }
 0x198   : > { %s1713_s15 = smov %s1719_s20  ;;  %14 = sbr.rel (!%p12_p8) target bundleno = 5 (0x5), region = 74 }
 0x19f   :  { %752 = vsyncpa [#allocation4], 1 }
 0x1a0   :  { %754 = vsyncpa [#allocation4 + $0x1], 1 }

</bundles_post_ra>
